<compile_context>
chip_gen: v7x
topology: tpu7x:2x2x1
jax: 0.10.0
libtpu: 0.0.40
codegen_flags: <defaults>
</compile_context>

<pallas_src>
import numpy as np
import jax
import jax.numpy as jnp
from jax import lax
from jax.experimental import pallas as pl
from jax.experimental.pallas import tpu as pltpu

EMBED_DIM = 25   # GloVe-25
LANE = 128
SUBLANE = 8


def _round_up(x, m):
    return ((x + m - 1) // m) * m


def _glove_embed_kernel(ids_ref, table_ref, out_ref):
    # ids_ref:   (TT, 1)      int32   token ids for this tile
    # table_ref: (V, D_pad)   float32 full lane-padded embedding matrix (VMEM)
    # out_ref:   (TT, D_pad)  float32 lane-dense output tile
    ids = ids_ref[...]                                   # (TT, 1)
    V = table_ref.shape[0]
    # PyTorch: x[x >= num_embeddings] = 0.  (Negative ids are out-of-contract
    # for the reference module too; here they yield an all-zero row.)
    safe = jnp.where(ids >= V, jnp.zeros_like(ids), ids)
    # One-hot gather on the MXU: (TT, V) @ (V, D_pad).  Fine for the small
    # vocabularies this VMEM-resident path targets; N is a full 128 lanes.
    col = lax.broadcasted_iota(jnp.int32, (ids.shape[0], V), 1)
    onehot = (safe == col).astype(jnp.float32)
    out_ref[...] = jnp.dot(onehot, table_ref[...],
                           preferred_element_type=jnp.float32)


def glove25_embedding(x, table, *, token_tile=512):
    """x: (B, S) integer token ids; table: (V, D) float32. Returns (B, S, D) f32."""
    B, S = x.shape
    V, D = table.shape
    T = B * S

    # Lane-dense output: pad embedding dim D -> multiple of 128 lanes.
    D_pad = _round_up(D, LANE)
    table_p = jnp.pad(table.astype(jnp.float32), ((0, 0), (0, D_pad - D)))

    # Token tile: big for throughput, clamped for tiny inputs, multiple of 8.
    token_tile = _round_up(min(token_tile, max(T, SUBLANE)), SUBLANE)
    T_pad = _round_up(T, token_tile)

    ids = x.reshape(T, 1).astype(jnp.int32)
    if T_pad != T:
        ids = jnp.pad(ids, ((0, T_pad - T), (0, 0)))     # pad ids hit row 0; sliced away

    # VMEM sanity (double-buffered out/table/ids + one-hot temp) vs. the
    # smallest default scoped VMEM (16 MiB on v5e).
    vmem_est = (2 * token_tile * D_pad        # output blocks
                + 2 * V * D_pad               # table buffers
                + 2 * token_tile * LANE       # ids blocks (lane-padded)
                + token_tile * V) * 4         # one-hot temp
    assert vmem_est < 12 * 1024 * 1024, (
        "vocab too large for the VMEM-resident one-hot design; "
        "use a scalar-prefetch DMA row-gather from HBM instead")

    grid = (T_pad // token_tile,)
    out = pl.pallas_call(
        _glove_embed_kernel,
        out_shape=jax.ShapeDtypeStruct((T_pad, D_pad), jnp.float32),
        grid=grid,
        in_specs=[
            # Token-id tile. (token_tile, 1) is lane-sparse but tiny (2 KiB of
            # payload per step); kept for robust lowering — dense id transport
            # is a minor win at these sizes.
            pl.BlockSpec((token_tile, 1), lambda i: (i, 0)),
            # Full table every step; constant index_map => DMA'd once by the
            # pipeline (the second pipeline buffer is wasted but negligible
            # at the small V this path supports).
            pl.BlockSpec((V, D_pad), lambda i: (0, 0)),
        ],
        out_specs=pl.BlockSpec((token_tile, D_pad), lambda i: (i, 0)),
        compiler_params=pltpu.CompilerParams(
            dimension_semantics=("parallel",)),   # token tiles shard across v7x cores
    )(ids, table_p)

    return out[:T, :D].reshape(B, S, D)


if __name__ == "__main__":
    key = jax.random.PRNGKey(0)
    k_tab, k_ids, k_tab2, k_ids2 = jax.random.split(key, 4)

    # --- small shape consistent with the module (batch=2, seq=8) ---
    vocab, B, S = 64, 2, 8
    table = jax.random.normal(k_tab, (vocab, EMBED_DIM), dtype=jnp.float32)
    # Some ids intentionally >= vocab to exercise the clamp-to-0 path.
    x = jax.random.randint(k_ids, (B, S), minval=0, maxval=vocab + 16,
                           dtype=jnp.int32)

    out = jax.block_until_ready(glove25_embedding(x, table))
    safe = jnp.where(x >= vocab, 0, x)
    ref = jnp.take(table, safe, axis=0).astype(jnp.float32)
    assert out.shape == (B, S, EMBED_DIM) and out.dtype == jnp.float32
    assert np.allclose(np.asarray(out), np.asarray(ref), atol=1e-6)

    # --- larger shape: exercises multi-step grid (grid=3) and token padding ---
    vocab2, B2, S2 = 500, 4, 300
    table2 = jax.random.normal(k_tab2, (vocab2, EMBED_DIM), dtype=jnp.float32)
    x2 = jax.random.randint(k_ids2, (B2, S2), minval=0, maxval=vocab2 + 64,
                            dtype=jnp.int32)

    out2 = jax.block_until_ready(glove25_embedding(x2, table2))
    safe2 = jnp.where(x2 >= vocab2, 0, x2)
    ref2 = jnp.take(table2, safe2, axis=0).astype(jnp.float32)
    assert out2.shape == (B2, S2, EMBED_DIM) and out2.dtype == jnp.float32
    assert np.allclose(np.asarray(out2), np.asarray(ref2), atol=1e-6)

    print("KERNEL_OK")
</pallas_src>

<mosaic_0001>
module attributes {stable_mosaic.version = 11 : i64} {
  func.func @_glove_embed_kernel(%arg0: i32, %arg1: memref<16x1xi32, #tpu.memory_space<vmem>>, %arg2: memref<64x128xf32, #tpu.memory_space<vmem>>, %arg3: memref<16x128xf32, #tpu.memory_space<vmem>>) attributes {dimension_semantics = [#tpu.dimension_semantics<parallel>], iteration_bounds = array<i64: 1>, scalar_prefetch = 0 : i64, scratch_operands = 0 : i64, tpu.core_type = #tpu.core_type<tc>, window_params = [{transform_indices = @transform_0, window_bounds = array<i64: 16, 1>}, {pipeline_mode = #tpu.pipeline_mode<synchronous>, transform_indices = @transform_1, window_bounds = array<i64: 64, 128>}, {transform_indices = @transform_2, window_bounds = array<i64: 16, 128>}]} {
    %c0 = arith.constant 0 : index
    %c0_0 = arith.constant 0 : index
    %0 = vector.load %arg1[%c0, %c0_0] : memref<16x1xi32, #tpu.memory_space<vmem>>, vector<16x1xi32>
    %c64_i32 = arith.constant 64 : i32
    %1 = vector.broadcast %c64_i32 : i32 to vector<16x1xi32>
    %2 = arith.cmpi sge, %0, %1 : vector<16x1xi32>
    %c0_i32 = arith.constant 0 : i32
    %3 = vector.broadcast %c0_i32 : i32 to vector<16x1xi32>
    %4 = arith.select %2, %3, %0 : vector<16x1xi1>, vector<16x1xi32>
    %5 = tpu.iota {dimensions = array<i32: 1>} : vector<16x64xi32>
    %6 = vector.broadcast %4 : vector<16x1xi32> to vector<16x64xi32>
    %7 = arith.cmpi eq, %6, %5 : vector<16x64xi32>
    %8 = arith.extui %7 : vector<16x64xi1> to vector<16x64xi32>
    %9 = arith.sitofp %8 : vector<16x64xi32> to vector<16x64xf32>
    %c0_1 = arith.constant 0 : index
    %c0_2 = arith.constant 0 : index
    %10 = vector.load %arg2[%c0_1, %c0_2] : memref<64x128xf32, #tpu.memory_space<vmem>>, vector<64x128xf32>
    %cst = arith.constant dense<0.000000e+00> : vector<16x128xf32>
    %11 = tpu.matmul %9, %10, %cst {dimension_numbers = #tpu.dot_dimension_numbers<[1], [0], [0], [1], [0, 0, 1, 1], [], []>} : vector<16x64xf32>, vector<64x128xf32>, vector<16x128xf32> -> vector<16x128xf32>
    %c0_3 = arith.constant 0 : index
    %c0_4 = arith.constant 0 : index
    %12 = vector.load %arg3[%c0_3, %c0_4] : memref<16x128xf32, #tpu.memory_space<vmem>>, vector<16x128xf32>
    tpu.vector_store %arg3[%c0_3, %c0_4], %11 {strides = array<i32>} : memref<16x128xf32, #tpu.memory_space<vmem>>, vector<16x128xf32>,
    return
  }
  func.func @transform_0(%arg0: i32) -> (i32, i32) {
    %c0_i32 = arith.constant 0 : i32
    %c0_i32_0 = arith.constant 0 : i32
    return %arg0, %c0_i32 : i32, i32
  }
  func.func @transform_1(%arg0: i32) -> (i32, i32) {
    %c0_i32 = arith.constant 0 : i32
    %c0_i32_0 = arith.constant 0 : i32
    %c0_i32_1 = arith.constant 0 : i32
    return %c0_i32, %c0_i32_0 : i32, i32
  }
  func.func @transform_2(%arg0: i32) -> (i32, i32) {
    %c0_i32 = arith.constant 0 : i32
    %c0_i32_0 = arith.constant 0 : i32
    return %arg0, %c0_i32 : i32, i32
  }
}

</mosaic_0001>

<bundles_post_ra>
// kernel: tpu_custom_call.1
= control target key start
LH: loop header
LB: loop body
LE: loop exit
PB: predicated region body
PF: predicated region fallthrough
CT: control target
= control target key end

     0   :  { %7 = vsyncpa [#allocation3], 0  ;;  %s316_s0 = inlined_call_operand.vmem [shape: s32[16,1], index: 0, kind: input, shape index: {}]   ;;  %s317_s1 = inlined_call_operand.hbm [shape: f32[64,128], index: 1, kind: input, shape index: {}]   ;;  %s318_s2 = inlined_call_operand.hbm [shape: f32[16,128], index: 2, kind: output, shape index: {}]  }
   0x1   :  { %8 = vsyncpa [#allocation4], 0  ;;  %s259_s9 = smov [#allocation2]   ;;  %s211_s13 = scalar_lea.hbm %s317_s1, 1024 }
   0x2   :  { %s16_s10 = sshll.u32 %s259_s9, 4  ;;  %p212_p0 = scmp.ne.s32.totalorder %s317_s1, %s211_s13  ;;  %s17_s10 = int_to_ptr.vmem [resolvable:$true] %s16_s10 }
   0x3   :  { %p215_p1 = scmp.lt.u32.totalorder %s211_s13, %s317_s1 }
   0x5   :  { %p217_p2 = pnand %p215_p1, %p212_p0 }
   0x7   :  { %220 = shalt.err (!%p217_p2)
}
   0x8   :  { %s221_s18 = scalar_lea.vmem %s17_s10, 1024  ;;  %p226_p4 = scmp.lt.s32.totalorder %s17_s10, %s17_s10 }
   0x9   :  { %p222_p3 = scmp.ne.s32.totalorder %s17_s10, %s221_s18  ;;  %p227_p5 = scmp.lt.s32.totalorder %s221_s18, %s221_s18 }
   0xb   :  { %p228_p6 = por %p227_p5, %p226_p4 }
   0xd   :  { %p229_p7 = pnand %p228_p6, %p222_p3 }
   0xf   :  { %232 = shalt.err (!%p229_p7)
}
  0x10   :  { %s260_s19 = smov 128   ;;  %s261_s20 = smov 8  }
  0x11   :  { %22 = dma.hbm_to_vmem [thread:$0]  %s317_s1, 1024, %s17_s10, [#allocation3], %s260_s19, %s260_s19, %s261_s20  }
  0x12   :  { %255 = dma.done.wait [#allocation3], 1024  }
  0x13   :  { %256 = vsyncadd [#allocation3], 4294966272  ;;  %v262_v0 = vmov 0   ;;  %v26_v1 = vld [vmem:[%s316_s0] sm:$0xff]  ;;  %v27_v2 = vld [vmem:[%s316_s0 + $0x8] sm:$0xff]  ;;  %v32_v17 = vlaneseq  ;;  %vm54_vm2 = vcmask 523264  }
  0x14   :  { %210 = vset.pattern.permute.xlu0 %v262_v0  ;;  %v46_v3 = vld [vmem:[#allocation2] sm:$0xff]  ;;  %vm28_vm0 = vcmp.ge.s32.totalorder %v26_v1, 64  ;;  %vm29_vm1 = vcmp.ge.s32.totalorder %v27_v2, 64  ;;  %v47_v4 = vld [vmem:[#allocation2 + $0x8] sm:$0xff]  ;;  %v48_v5 = vld [vmem:[#allocation2 + $0x10] sm:$0xff]  ;;  %v263_v20 = vmov 0.0  }
  0x15   :  { %v49_v6 = vld [vmem:[#allocation2 + $0x18] sm:$0xff]  ;;  %v30_v7 = vsel %vm28_vm0, 0, %v26_v1  ;;  %v188_v8 = vpack.c.bf16 %v47_v4, %v46_v3  ;;  %v50_v10 = vld [vmem:[#allocation2 + $0x20] sm:$0xff]  ;;  %v51_v11 = vld [vmem:[#allocation2 + $0x28] sm:$0xff]  ;;  %v31_v12 = vsel %vm29_vm1, 0, %v27_v2  ;;  %v33_v18 = vand.u32 127, %v32_v17 }
  0x16   :  { %v192_v9 = vpack.c.bf16 %v49_v6, %v48_v5  ;;  %35 = vperm.xlu0 %210, %v30_v7   ;;  %v196_v13 = vpack.c.bf16 %v51_v11, %v50_v10  ;;  %v52_v14 = vld [vmem:[#allocation2 + $0x30] sm:$0xff]  ;;  %v53_v15 = vld [vmem:[#allocation2 + $0x38] sm:$0xff]  ;;  %s264_s0 = smov [#allocation5]  }
  0x17   :  { %189 = vmatprep.subr.bf16.mxu0 %v188_v8  ;;  %v200_v16 = vpack.c.bf16 %v53_v15, %v52_v14  ;;  %s143_s1 = sshll.u32 %s264_s0, 4  ;;  %s144_s1 = int_to_ptr.vmem [resolvable:$true] %s143_s1 }
  0x18   :  { %191 = vmatpush3.bf16.msra.mxu0 %v188_v8  ;;  %s233_s27 = scalar_lea.vmem %s144_s1, 256  ;;  %p238_p9 = scmp.lt.s32.totalorder %s144_s1, %s144_s1 }
  0x19   :  { %193 = vmatprep.subr.bf16.mxu0 %v192_v9  ;;  %p234_p8 = scmp.ne.s32.totalorder %s144_s1, %s233_s27  ;;  %p239_p10 = scmp.lt.s32.totalorder %s233_s27, %s233_s27 }
  0x1a   :  { %38 = vperm.xlu0 %210, %v31_v12  }
  0x1b   :  { %p240_p11 = por %p239_p10, %p238_p9 }
  0x1c   :  { %195 = vmatpush3.bf16.msra.mxu0 %v192_v9 }
  0x1d   :  { %197 = vmatprep.subr.bf16.mxu0 %v196_v13  ;;  %p241_p12 = pnand %p240_p11, %p234_p8 }
  0x20   :  { %199 = vmatpush3.bf16.msra.mxu0 %v196_v13 }
  0x21   :  { %201 = vmatprep.subr.bf16.mxu0 %v200_v16 }
  0x24   :  { %203 = vmatpush3.bf16.msra.mxu0 %v200_v16 }
  0x95   :  { %v36_v19 = vpop.permute.xlu0 %35 }
  0x96   :  { %vm40_vm3 = vcmp.eq.s32.totalorder %v36_v19, %v33_v18 }
  0x97   :  { %v155_v21 = vsel %vm40_vm3, 1.0, %v263_v20 }
  0x98   :  { %185 = vmatprep.mubr.msk.f32.mxu0 %vm54_vm2, %v155_v21 }
  0x99   :  { %v39_v22 = vpop.permute.xlu0 %38 }
  0x9a   :  { %vm41_vm4 = vcmp.eq.s32.totalorder %v39_v22, %v33_v18 }
  0x9b   :  { %v156_v23 = vsel %vm41_vm4, 1.0, %v263_v20 }
  0x9c   :  { %186 = vmatmul.mubr.msk.f32.vlgmr.msra.gmra.mrb[0].mxu0 %vm54_vm2, %v156_v23 }
 0x16f   :  { %v187_v24 = vpop.f32.mrb[0].mxu0 }
 0x170   :  { %137 = vst [vmem:[#allocation5 + $0x8] sm:$0xff] %v187_v24  ;;  %v127_v25 = vpop.f32.mrb[1].mxu0 }
 0x171   :  { %136 = vst [vmem:[#allocation5] sm:$0xff] %v127_v25 }
 0x172   :  { %244 = shalt.err (!%p241_p12)
}
 0x173   :  { %s245_s30 = scalar_lea.hbm %s318_s2, 256 }
 0x174   :  { %p246_p13 = scmp.ne.s32.totalorder %s318_s2, %s245_s30  ;;  %p249_p0 = scmp.lt.u32.totalorder %s245_s30, %s318_s2 }
 0x176   :  { %p251_p1 = pnand %p249_p0, %p246_p13 }
 0x178   :  { %254 = shalt.err (!%p251_p1)
}
 0x179   :  { %149 = dma.vmem_to_hbm [thread:$0]  %s144_s1, 256, %s318_s2, [#allocation4], %s260_s19, %s260_s19, %s261_s20  }
 0x17a   :  { %257 = dma.done.wait [#allocation4], 256  }
 0x17b   :  { %258 = vsyncadd [#allocation4], 4294967040 }
 0x17c   :  { %153 = vsyncpa [#allocation3], 1 }
 0x17d   :  { %154 = vsyncpa [#allocation4], 1 }

</bundles_post_ra>
